<compile_context>
chip_gen: v6e
topology: v6e:2x2x1
jax: 0.10.0
libtpu: 0.0.40
codegen_flags: <defaults>
</compile_context>

<pallas_src>
import jax
import jax.numpy as jnp
from jax.experimental import pallas as pl
from jax.experimental.pallas import tpu as pltpu

_EPS = 1e-5
_LANE = 128
_OUT_LANES = 128  # lane-dense writeback width; wrapper slices column 0


def _round_up(x, m):
    return (x + m - 1) // m * m


# ----------------------------------------------------------------------------
# Kernel: per feature tile -> folded BN -> bf16 partial matmul into f32 VMEM
# accumulator; topic half + bias in the prologue; LeakyReLU + w2 lane-reduce
# epilogue on the last tile.
# ----------------------------------------------------------------------------
def _disc_kernel(x1_ref, g1_ref, be1_ref, w1a_ref,
                 x2_ref, g2_ref, be2_ref, w1b_ref,
                 b1_ref, w2_ref, b2_ref,
                 o_ref, acc_ref):
    f = pl.program_id(0)
    n_f = pl.num_programs(0)

    def bn_fold(x, gamma, beta):
        # Training-mode BatchNorm1d folded into a single FMA over the big
        # (B, tile) tensor: scale/shift computed on (1, tile) vectors.
        mean = jnp.mean(x, axis=0, keepdims=True)
        var = jnp.mean(x * x, axis=0, keepdims=True) - mean * mean
        var = jnp.maximum(var, 0.0)                    # biased batch variance
        scale = gamma * jax.lax.rsqrt(var + _EPS)      # EUP rsqrt on (1, tile)
        shift = beta - mean * scale
        return x * scale + shift

    # ---- prologue (runs once): bias + topic-half contribution ---------------
    @pl.when(f == 0)
    def _():
        x2 = x2_ref[...].astype(jnp.float32)                       # (B, T)
        xn2 = bn_fold(x2, g2_ref[...], be2_ref[...]).astype(jnp.bfloat16)
        acc_ref[...] = b1_ref[...] + jnp.dot(
            xn2, w1b_ref[...], preferred_element_type=jnp.float32)  # (B, Hp)

    # ---- per feature tile: BN + partial matmul accumulate -------------------
    x1 = x1_ref[...].astype(jnp.float32)                           # (B, tile_f)
    xn1 = bn_fold(x1, g1_ref[...], be1_ref[...]).astype(jnp.bfloat16)
    acc_ref[...] += jnp.dot(xn1, w1a_ref[...],
                            preferred_element_type=jnp.float32)    # (B, Hp)

    # ---- epilogue (last tile): LeakyReLU -> w2 reduce -> lane-dense store ----
    @pl.when(f == n_f - 1)
    def _():
        h = acc_ref[...]
        h = jnp.where(h >= 0.0, h, 0.01 * h)           # LeakyReLU(0.01)
        # N=1 linear as VPU multiply + XLU lane reduce (padding cols are 0).
        logits = jnp.sum(h * w2_ref[...], axis=-1, keepdims=True) + b2_ref[...]
        o_ref[...] = jnp.broadcast_to(logits, o_ref.shape).astype(o_ref.dtype)


# ----------------------------------------------------------------------------
# Wrapper
# ----------------------------------------------------------------------------
def discriminator_forward(input1, input2, kp):
    """input1: (B, vocab), input2: (B, topic). Returns (B, 1) logits."""
    B, V = input1.shape
    T = input2.shape[1]
    assert V == kp["vocab_size"] and T == kp["topic_num"]
    tile_f, v_pad, h_pad = kp["tile_f"], kp["v_pad"], kp["h_pad"]
    n_f = v_pad // tile_f

    x1 = input1.astype(jnp.float32)
    if v_pad != V:
        # Zero-pad the vocab axis up to a tile multiple (weight rows are 0).
        x1 = jnp.pad(x1, ((0, 0), (0, v_pad - V)))
    x2 = input2.astype(jnp.float32)

    flops = 2 * B * (v_pad + T) * h_pad + 8 * B * (v_pad + T) + 4 * B * h_pad
    bytes_accessed = (4 * B * (v_pad + T) + 2 * (v_pad + T) * h_pad
                      + 8 * (v_pad + T) + 12 * h_pad + 4 + 4 * B * _OUT_LANES)

    # VMEM budget sized from the chosen tiles (double-buffered blocks + margin).
    per_tile = 4 * B * tile_f + 8 * tile_f + 2 * tile_f * h_pad
    resident = (4 * B * T + 8 * T + 2 * T * h_pad + 8 * h_pad + 4
                + 4 * B * _OUT_LANES)
    raw_vmem = 2 * per_tile + 2 * resident + 4 * B * h_pad
    vmem_limit = int(min(48 * 1024 * 1024, max(8 * 1024 * 1024, 4 * raw_vmem)))

    grid_spec = pltpu.PrefetchScalarGridSpec(
        num_scalar_prefetch=0,
        grid=(n_f,),
        in_specs=[
            pl.BlockSpec((B, tile_f), lambda f: (0, f)),       # x1 tile
            pl.BlockSpec((1, tile_f), lambda f: (0, f)),       # gamma1 tile
            pl.BlockSpec((1, tile_f), lambda f: (0, f)),       # beta1 tile
            pl.BlockSpec((tile_f, h_pad), lambda f: (f, 0)),   # w1a_t tile (bf16)
            pl.BlockSpec((B, T), lambda f: (0, 0)),            # x2 (resident)
            pl.BlockSpec((1, T), lambda f: (0, 0)),            # gamma2
            pl.BlockSpec((1, T), lambda f: (0, 0)),            # beta2
            pl.BlockSpec((T, h_pad), lambda f: (0, 0)),        # w1b_t (bf16)
            pl.BlockSpec((1, h_pad), lambda f: (0, 0)),        # b1
            pl.BlockSpec((1, h_pad), lambda f: (0, 0)),        # w2_row
            pl.BlockSpec((1, 1), lambda f: (0, 0)),            # b2
        ],
        out_specs=pl.BlockSpec((B, _OUT_LANES), lambda f: (0, 0)),
        scratch_shapes=[pltpu.VMEM((B, h_pad), jnp.float32)],  # h accumulator
    )

    padded = pl.pallas_call(
        _disc_kernel,
        grid_spec=grid_spec,
        out_shape=jax.ShapeDtypeStruct((B, _OUT_LANES), jnp.float32),
        compiler_params=pltpu.CompilerParams(
            dimension_semantics=("arbitrary",),   # F axis is a reduction
            vmem_limit_bytes=vmem_limit),
        cost_estimate=pl.CostEstimate(flops=flops, transcendentals=v_pad + T,
                                      bytes_accessed=bytes_accessed),
    )(x1, kp["gamma1"], kp["beta1"], kp["w1a_t"],
      x2, kp["gamma2"], kp["beta2"], kp["w1b_t"],
      kp["b1"], kp["w2_row"], kp["b2"])

    return padded[:, :1]                                    # (B, 1)


# ----------------------------------------------------------------------------
# Parameter setup glue (plain JAX)
# ----------------------------------------------------------------------------
def spectral_normalize(w, n_iter=30):
    """Approximate nn.utils.spectral_norm: divide by the top singular value
    (power iteration).  w has shape (out, in)."""
    out_dim = w.shape[0]
    u = jnp.ones((out_dim,), jnp.float32) / jnp.sqrt(out_dim)
    v = None
    for _ in range(n_iter):
        v = w.T @ u
        v = v / (jnp.linalg.norm(v) + 1e-12)
        u = w @ v
        u = u / (jnp.linalg.norm(u) + 1e-12)
    sigma = u @ (w @ v)
    return w / sigma


def init_params(key, vocab, topic, hidden):
    """Logical (PyTorch-shaped) parameters."""
    feat = vocab + topic
    k1, k2, k3, k4 = jax.random.split(key, 4)
    bound1 = 1.0 / jnp.sqrt(feat)
    w1 = jax.random.uniform(k1, (hidden, feat), jnp.float32, -bound1, bound1)
    b1 = jax.random.uniform(k2, (hidden,), jnp.float32, -bound1, bound1)
    bound2 = 1.0 / jnp.sqrt(hidden)
    w2 = jax.random.uniform(k3, (1, hidden), jnp.float32, -bound2, bound2)
    b2 = jax.random.uniform(k4, (1,), jnp.float32, -bound2, bound2)
    # TODO(synk): PyTorch's spectral_norm updates u with one power iteration
    # per training forward; here sigma is estimated once at init and frozen.
    w1 = spectral_normalize(w1)
    w2 = spectral_normalize(w2)
    # TODO(synk): BatchNorm1d running_mean/var are not tracked (training-mode
    # batch statistics only), so an eval-mode forward is not reproducible.
    return dict(gamma=jnp.ones((feat,), jnp.float32),
                beta=jnp.zeros((feat,), jnp.float32),
                w1=w1, b1=b1, w2=w2, b2=b2)


def pack_params(params, vocab, topic, hidden, *, tile_f=512, hidden_align=128):
    """Pad + cast parameters once for the kernel (bf16 weights, lane-aligned
    hidden dim, vocab axis padded to a feature-tile multiple)."""
    tile_f = min(tile_f, _round_up(vocab, _LANE))     # multiple of 128
    v_pad = _round_up(vocab, tile_f)
    h_pad = _round_up(hidden, hidden_align)

    w1t = params["w1"].T                               # (feat, hidden)
    w1a = w1t[:vocab]                                  # (vocab, hidden)
    w1b = w1t[vocab:]                                  # (topic, hidden)

    w1a_p = jnp.zeros((v_pad, h_pad), jnp.bfloat16)
    w1a_p = w1a_p.at[:vocab, :hidden].set(w1a.astype(jnp.bfloat16))
    w1b_p = jnp.zeros((topic, h_pad), jnp.bfloat16)
    w1b_p = w1b_p.at[:, :hidden].set(w1b.astype(jnp.bfloat16))

    b1_p = jnp.zeros((1, h_pad), jnp.float32).at[0, :hidden].set(params["b1"])
    w2_p = jnp.zeros((1, h_pad), jnp.float32).at[0, :hidden].set(params["w2"][0])

    g1 = jnp.zeros((1, v_pad), jnp.float32).at[0, :vocab].set(params["gamma"][:vocab])
    be1 = jnp.zeros((1, v_pad), jnp.float32).at[0, :vocab].set(params["beta"][:vocab])
    g2 = params["gamma"][vocab:].reshape(1, topic)
    be2 = params["beta"][vocab:].reshape(1, topic)

    return dict(tile_f=tile_f, v_pad=v_pad, h_pad=h_pad,
                vocab_size=vocab, topic_num=topic,
                gamma1=g1, beta1=be1, gamma2=g2, beta2=be2,
                w1a_t=w1a_p, w1b_t=w1b_p, b1=b1_p,
                w2_row=w2_p, b2=params["b2"].reshape(1, 1))


def reference_forward(input1, input2, params):
    """Pure-JAX reference (f32 throughout), mirrors the PyTorch module."""
    x = jnp.concatenate([input1, input2], axis=1).astype(jnp.float32)
    mean = jnp.mean(x, axis=0)
    var = jnp.mean(jnp.square(x - mean), axis=0)
    xn = (x - mean) * jax.lax.rsqrt(var + _EPS) * params["gamma"] + params["beta"]
    h = xn @ params["w1"].T + params["b1"]
    h = jnp.where(h >= 0.0, h, 0.01 * h)
    return h @ params["w2"].T + params["b2"]


# ----------------------------------------------------------------------------
if __name__ == "__main__":
    # Small shapes consistent with the module; vocab chosen so the feature
    # grid has several tiles (tile_f=128 -> 3 grid steps).
    B, vocab_size, topic_num, hidden_num = 8, 300, 20, 32

    key = jax.random.PRNGKey(0)
    k_in1, k_in2, k_p = jax.random.split(key, 3)
    input1 = jax.random.normal(k_in1, (B, vocab_size), jnp.float32)
    input2 = jax.random.normal(k_in2, (B, topic_num), jnp.float32)

    params = init_params(k_p, vocab_size, topic_num, hidden_num)
    kparams = pack_params(params, vocab_size, topic_num, hidden_num, tile_f=128)

    out = discriminator_forward(input1, input2, kparams)
    out = jax.block_until_ready(out)

    assert out.shape == (B, 1)
    assert bool(jnp.all(jnp.isfinite(out)))
    ref = reference_forward(input1, input2, params)
    assert bool(jnp.allclose(out, ref, rtol=5e-2, atol=5e-2)), (
        "max abs err %g" % float(jnp.max(jnp.abs(out - ref))))
    print("KERNEL_OK")
</pallas_src>

<mosaic_0001>
module attributes {stable_mosaic.version = 11 : i64} {
  func.func @_disc_kernel(%arg0: i32, %arg1: memref<8x128xf32, #tpu.memory_space<vmem>>, %arg2: memref<1x128xf32, #tpu.memory_space<vmem>>, %arg3: memref<1x128xf32, #tpu.memory_space<vmem>>, %arg4: memref<128x128xbf16, #tpu.memory_space<vmem>>, %arg5: memref<8x20xf32, #tpu.memory_space<vmem>>, %arg6: memref<1x20xf32, #tpu.memory_space<vmem>>, %arg7: memref<1x20xf32, #tpu.memory_space<vmem>>, %arg8: memref<20x128xbf16, #tpu.memory_space<vmem>>, %arg9: memref<1x128xf32, #tpu.memory_space<vmem>>, %arg10: memref<1x128xf32, #tpu.memory_space<vmem>>, %arg11: memref<1x1xf32, #tpu.memory_space<vmem>>, %arg12: memref<8x128xf32, #tpu.memory_space<vmem>>, %arg13: memref<8x128xf32, #tpu.memory_space<vmem>>) attributes {dimension_semantics = [#tpu.dimension_semantics<arbitrary>], iteration_bounds = array<i64: 3>, scalar_prefetch = 0 : i64, scratch_operands = 1 : i64, tpu.core_type = #tpu.core_type<tc>, window_params = [{transform_indices = @transform_0, window_bounds = array<i64: 8, 128>}, {transform_indices = @transform_1, window_bounds = array<i64: 1, 128>}, {transform_indices = @transform_2, window_bounds = array<i64: 1, 128>}, {transform_indices = @transform_3, window_bounds = array<i64: 128, 128>}, {pipeline_mode = #tpu.pipeline_mode<synchronous>, transform_indices = @transform_4, window_bounds = array<i64: 8, 20>}, {pipeline_mode = #tpu.pipeline_mode<synchronous>, transform_indices = @transform_5, window_bounds = array<i64: 1, 20>}, {pipeline_mode = #tpu.pipeline_mode<synchronous>, transform_indices = @transform_6, window_bounds = array<i64: 1, 20>}, {pipeline_mode = #tpu.pipeline_mode<synchronous>, transform_indices = @transform_7, window_bounds = array<i64: 20, 128>}, {pipeline_mode = #tpu.pipeline_mode<synchronous>, transform_indices = @transform_8, window_bounds = array<i64: 1, 128>}, {pipeline_mode = #tpu.pipeline_mode<synchronous>, transform_indices = @transform_9, window_bounds = array<i64: 1, 128>}, {pipeline_mode = #tpu.pipeline_mode<synchronous>, transform_indices = @transform_10, window_bounds = array<i64: 1, 1>}, {pipeline_mode = #tpu.pipeline_mode<synchronous>, transform_indices = @transform_11, window_bounds = array<i64: 8, 128>}]} {
    %c0_i32 = arith.constant 0 : i32
    %0 = arith.cmpi eq, %arg0, %c0_i32 : i32
    %1 = arith.extui %0 : i1 to i32
    %c0_i32_0 = arith.constant 0 : i32
    %2 = arith.cmpi ne, %1, %c0_i32_0 : i32
    scf.if %2 {
      %c0_19 = arith.constant 0 : index
      %c0_20 = arith.constant 0 : index
      %38 = vector.load %arg5[%c0_19, %c0_20] : memref<8x20xf32, #tpu.memory_space<vmem>>, vector<8x20xf32>
      %c0_21 = arith.constant 0 : index
      %c0_22 = arith.constant 0 : index
      %39 = vector.load %arg6[%c0_21, %c0_22] : memref<1x20xf32, #tpu.memory_space<vmem>>, vector<1x20xf32>
      %c0_23 = arith.constant 0 : index
      %c0_24 = arith.constant 0 : index
      %40 = vector.load %arg7[%c0_23, %c0_24] : memref<1x20xf32, #tpu.memory_space<vmem>>, vector<1x20xf32>
      %cst_25 = arith.constant dense<0.000000e+00> : vector<20xf32>
      %41 = vector.multi_reduction <add>, %38, %cst_25 [0] : vector<8x20xf32> to vector<20xf32>
      %42 = vector.shape_cast %41 : vector<20xf32> to vector<1x20xf32>
      %cst_26 = arith.constant 8.000000e+00 : f32
      %43 = vector.broadcast %cst_26 : f32 to vector<1x20xf32>
      %44 = arith.divf %42, %43 : vector<1x20xf32>
      %45 = arith.mulf %38, %38 : vector<8x20xf32>
      %cst_27 = arith.constant dense<0.000000e+00> : vector<20xf32>
      %46 = vector.multi_reduction <add>, %45, %cst_27 [0] : vector<8x20xf32> to vector<20xf32>
      %47 = vector.shape_cast %46 : vector<20xf32> to vector<1x20xf32>
      %cst_28 = arith.constant 8.000000e+00 : f32
      %48 = vector.broadcast %cst_28 : f32 to vector<1x20xf32>
      %49 = arith.divf %47, %48 : vector<1x20xf32>
      %50 = arith.mulf %44, %44 : vector<1x20xf32>
      %51 = arith.subf %49, %50 : vector<1x20xf32>
      %cst_29 = arith.constant 0.000000e+00 : f32
      %52 = vector.broadcast %cst_29 : f32 to vector<1x20xf32>
      %53 = arith.maximumf %51, %52 : vector<1x20xf32>
      %cst_30 = arith.constant 9.99999974E-6 : f32
      %54 = vector.broadcast %cst_30 : f32 to vector<1x20xf32>
      %55 = arith.addf %53, %54 : vector<1x20xf32>
      %56 = math.rsqrt %55 : vector<1x20xf32>
      %57 = arith.mulf %39, %56 : vector<1x20xf32>
      %58 = arith.mulf %44, %57 : vector<1x20xf32>
      %59 = arith.subf %40, %58 : vector<1x20xf32>
      %60 = vector.broadcast %57 : vector<1x20xf32> to vector<8x20xf32>
      %61 = arith.mulf %38, %60 : vector<8x20xf32>
      %62 = vector.broadcast %59 : vector<1x20xf32> to vector<8x20xf32>
      %63 = arith.addf %61, %62 : vector<8x20xf32>
      %64 = arith.truncf %63 : vector<8x20xf32> to vector<8x20xbf16>
      %c0_31 = arith.constant 0 : index
      %c0_32 = arith.constant 0 : index
      %65 = vector.load %arg9[%c0_31, %c0_32] : memref<1x128xf32, #tpu.memory_space<vmem>>, vector<1x128xf32>
      %c0_33 = arith.constant 0 : index
      %c0_34 = arith.constant 0 : index
      %66 = vector.load %arg8[%c0_33, %c0_34] : memref<20x128xbf16, #tpu.memory_space<vmem>>, vector<20x128xbf16>
      %cst_35 = arith.constant dense<0.000000e+00> : vector<8x128xf32>
      %67 = tpu.matmul %64, %66, %cst_35 {dimension_numbers = #tpu.dot_dimension_numbers<[1], [0], [0], [1], [0, 0, 1, 1], [], []>} : vector<8x20xbf16>, vector<20x128xbf16>, vector<8x128xf32> -> vector<8x128xf32>
      %68 = vector.broadcast %65 : vector<1x128xf32> to vector<8x128xf32>
      %69 = arith.addf %68, %67 : vector<8x128xf32>
      %c0_36 = arith.constant 0 : index
      %c0_37 = arith.constant 0 : index
      %70 = vector.load %arg13[%c0_36, %c0_37] : memref<8x128xf32, #tpu.memory_space<vmem>>, vector<8x128xf32>
      tpu.vector_store %arg13[%c0_36, %c0_37], %69 {strides = array<i32>} : memref<8x128xf32, #tpu.memory_space<vmem>>, vector<8x128xf32>,
    } else {
    }
    %c0 = arith.constant 0 : index
    %c0_1 = arith.constant 0 : index
    %3 = vector.load %arg1[%c0, %c0_1] : memref<8x128xf32, #tpu.memory_space<vmem>>, vector<8x128xf32>
    %c0_2 = arith.constant 0 : index
    %c0_3 = arith.constant 0 : index
    %4 = vector.load %arg2[%c0_2, %c0_3] : memref<1x128xf32, #tpu.memory_space<vmem>>, vector<1x128xf32>
    %c0_4 = arith.constant 0 : index
    %c0_5 = arith.constant 0 : index
    %5 = vector.load %arg3[%c0_4, %c0_5] : memref<1x128xf32, #tpu.memory_space<vmem>>, vector<1x128xf32>
    %cst = arith.constant dense<0.000000e+00> : vector<128xf32>
    %6 = vector.multi_reduction <add>, %3, %cst [0] : vector<8x128xf32> to vector<128xf32>
    %7 = vector.shape_cast %6 : vector<128xf32> to vector<1x128xf32>
    %cst_6 = arith.constant 8.000000e+00 : f32
    %8 = vector.broadcast %cst_6 : f32 to vector<1x128xf32>
    %9 = arith.divf %7, %8 : vector<1x128xf32>
    %10 = arith.mulf %3, %3 : vector<8x128xf32>
    %cst_7 = arith.constant dense<0.000000e+00> : vector<128xf32>
    %11 = vector.multi_reduction <add>, %10, %cst_7 [0] : vector<8x128xf32> to vector<128xf32>
    %12 = vector.shape_cast %11 : vector<128xf32> to vector<1x128xf32>
    %cst_8 = arith.constant 8.000000e+00 : f32
    %13 = vector.broadcast %cst_8 : f32 to vector<1x128xf32>
    %14 = arith.divf %12, %13 : vector<1x128xf32>
    %15 = arith.mulf %9, %9 : vector<1x128xf32>
    %16 = arith.subf %14, %15 : vector<1x128xf32>
    %cst_9 = arith.constant 0.000000e+00 : f32
    %17 = vector.broadcast %cst_9 : f32 to vector<1x128xf32>
    %18 = arith.maximumf %16, %17 : vector<1x128xf32>
    %cst_10 = arith.constant 9.99999974E-6 : f32
    %19 = vector.broadcast %cst_10 : f32 to vector<1x128xf32>
    %20 = arith.addf %18, %19 : vector<1x128xf32>
    %21 = math.rsqrt %20 : vector<1x128xf32>
    %22 = arith.mulf %4, %21 : vector<1x128xf32>
    %23 = arith.mulf %9, %22 : vector<1x128xf32>
    %24 = arith.subf %5, %23 : vector<1x128xf32>
    %25 = vector.broadcast %22 : vector<1x128xf32> to vector<8x128xf32>
    %26 = arith.mulf %3, %25 : vector<8x128xf32>
    %27 = vector.broadcast %24 : vector<1x128xf32> to vector<8x128xf32>
    %28 = arith.addf %26, %27 : vector<8x128xf32>
    %29 = arith.truncf %28 : vector<8x128xf32> to vector<8x128xbf16>
    %c0_11 = arith.constant 0 : index
    %c0_12 = arith.constant 0 : index
    %30 = vector.load %arg13[%c0_11, %c0_12] : memref<8x128xf32, #tpu.memory_space<vmem>>, vector<8x128xf32>
    %c0_13 = arith.constant 0 : index
    %c0_14 = arith.constant 0 : index
    %31 = vector.load %arg4[%c0_13, %c0_14] : memref<128x128xbf16, #tpu.memory_space<vmem>>, vector<128x128xbf16>
    %cst_15 = arith.constant dense<0.000000e+00> : vector<8x128xf32>
    %32 = tpu.matmul %29, %31, %cst_15 {dimension_numbers = #tpu.dot_dimension_numbers<[1], [0], [0], [1], [0, 0, 1, 1], [], []>} : vector<8x128xbf16>, vector<128x128xbf16>, vector<8x128xf32> -> vector<8x128xf32>
    %33 = arith.addf %30, %32 : vector<8x128xf32>
    %c0_16 = arith.constant 0 : index
    %c0_17 = arith.constant 0 : index
    %34 = vector.load %arg13[%c0_16, %c0_17] : memref<8x128xf32, #tpu.memory_space<vmem>>, vector<8x128xf32>
    tpu.vector_store %arg13[%c0_16, %c0_17], %33 {strides = array<i32>} : memref<8x128xf32, #tpu.memory_space<vmem>>, vector<8x128xf32>,
    %c2_i32 = arith.constant 2 : i32
    %35 = arith.cmpi eq, %arg0, %c2_i32 : i32
    %36 = arith.extui %35 : i1 to i32
    %c0_i32_18 = arith.constant 0 : i32
    %37 = arith.cmpi ne, %36, %c0_i32_18 : i32
    scf.if %37 {
      %c0_19 = arith.constant 0 : index
      %c0_20 = arith.constant 0 : index
      %38 = vector.load %arg13[%c0_19, %c0_20] : memref<8x128xf32, #tpu.memory_space<vmem>>, vector<8x128xf32>
      %cst_21 = arith.constant 0.000000e+00 : f32
      %39 = vector.broadcast %cst_21 : f32 to vector<8x128xf32>
      %40 = arith.cmpf oge, %38, %39 : vector<8x128xf32>
      %cst_22 = arith.constant 0.00999999977 : f32
      %41 = vector.broadcast %cst_22 : f32 to vector<8x128xf32>
      %42 = arith.mulf %41, %38 : vector<8x128xf32>
      %43 = arith.select %40, %38, %42 : vector<8x128xi1>, vector<8x128xf32>
      %c0_23 = arith.constant 0 : index
      %c0_24 = arith.constant 0 : index
      %44 = vector.load %arg10[%c0_23, %c0_24] : memref<1x128xf32, #tpu.memory_space<vmem>>, vector<1x128xf32>
      %45 = vector.broadcast %44 : vector<1x128xf32> to vector<8x128xf32>
      %46 = arith.mulf %43, %45 : vector<8x128xf32>
      %cst_25 = arith.constant dense<0.000000e+00> : vector<8xf32>
      %47 = vector.multi_reduction <add>, %46, %cst_25 [1] : vector<8x128xf32> to vector<8xf32>
      %48 = vector.shape_cast %47 : vector<8xf32> to vector<8x1xf32>
      %c0_26 = arith.constant 0 : index
      %c0_27 = arith.constant 0 : index
      %49 = vector.load %arg11[%c0_26, %c0_27] : memref<1x1xf32, #tpu.memory_space<vmem>>, vector<1x1xf32>
      %50 = vector.broadcast %49 : vector<1x1xf32> to vector<8x1xf32>
      %51 = arith.addf %48, %50 : vector<8x1xf32>
      %52 = vector.shape_cast %51 : vector<8x1xf32> to vector<8x1xf32>
      %53 = vector.broadcast %52 : vector<8x1xf32> to vector<8x128xf32>
      %c0_28 = arith.constant 0 : index
      %c0_29 = arith.constant 0 : index
      %54 = vector.load %arg12[%c0_28, %c0_29] : memref<8x128xf32, #tpu.memory_space<vmem>>, vector<8x128xf32>
      tpu.vector_store %arg12[%c0_28, %c0_29], %53 {strides = array<i32>} : memref<8x128xf32, #tpu.memory_space<vmem>>, vector<8x128xf32>,
    } else {
    }
    return
  }
  func.func @transform_0(%arg0: i32) -> (i32, i32) {
    %c0_i32 = arith.constant 0 : i32
    %c0_i32_0 = arith.constant 0 : i32
    return %c0_i32, %arg0 : i32, i32
  }
  func.func @transform_1(%arg0: i32) -> (i32, i32) {
    %c0_i32 = arith.constant 0 : i32
    %c0_i32_0 = arith.constant 0 : i32
    return %c0_i32, %arg0 : i32, i32
  }
  func.func @transform_2(%arg0: i32) -> (i32, i32) {
    %c0_i32 = arith.constant 0 : i32
    %c0_i32_0 = arith.constant 0 : i32
    return %c0_i32, %arg0 : i32, i32
  }
  func.func @transform_3(%arg0: i32) -> (i32, i32) {
    %c0_i32 = arith.constant 0 : i32
    %c0_i32_0 = arith.constant 0 : i32
    return %arg0, %c0_i32 : i32, i32
  }
  func.func @transform_4(%arg0: i32) -> (i32, i32) {
    %c0_i32 = arith.constant 0 : i32
    %c0_i32_0 = arith.constant 0 : i32
    %c0_i32_1 = arith.constant 0 : i32
    return %c0_i32, %c0_i32_0 : i32, i32
  }
  func.func @transform_5(%arg0: i32) -> (i32, i32) {
    %c0_i32 = arith.constant 0 : i32
    %c0_i32_0 = arith.constant 0 : i32
    %c0_i32_1 = arith.constant 0 : i32
    return %c0_i32, %c0_i32_0 : i32, i32
  }
  func.func @transform_6(%arg0: i32) -> (i32, i32) {
    %c0_i32 = arith.constant 0 : i32
    %c0_i32_0 = arith.constant 0 : i32
    %c0_i32_1 = arith.constant 0 : i32
    return %c0_i32, %c0_i32_0 : i32, i32
  }
  func.func @transform_7(%arg0: i32) -> (i32, i32) {
    %c0_i32 = arith.constant 0 : i32
    %c0_i32_0 = arith.constant 0 : i32
    %c0_i32_1 = arith.constant 0 : i32
    return %c0_i32, %c0_i32_0 : i32, i32
  }
  func.func @transform_8(%arg0: i32) -> (i32, i32) {
    %c0_i32 = arith.constant 0 : i32
    %c0_i32_0 = arith.constant 0 : i32
    %c0_i32_1 = arith.constant 0 : i32
    return %c0_i32, %c0_i32_0 : i32, i32
  }
  func.func @transform_9(%arg0: i32) -> (i32, i32) {
    %c0_i32 = arith.constant 0 : i32
    %c0_i32_0 = arith.constant 0 : i32
    %c0_i32_1 = arith.constant 0 : i32
    return %c0_i32, %c0_i32_0 : i32, i32
  }
  func.func @transform_10(%arg0: i32) -> (i32, i32) {
    %c0_i32 = arith.constant 0 : i32
    %c0_i32_0 = arith.constant 0 : i32
    %c0_i32_1 = arith.constant 0 : i32
    return %c0_i32, %c0_i32_0 : i32, i32
  }
  func.func @transform_11(%arg0: i32) -> (i32, i32) {
    %c0_i32 = arith.constant 0 : i32
    %c0_i32_0 = arith.constant 0 : i32
    %c0_i32_1 = arith.constant 0 : i32
    return %c0_i32, %c0_i32_0 : i32, i32
  }
}

</mosaic_0001>

<bundles_post_ra>
// kernel: tpu_custom_call.1
= control target key start
LH: loop header
LB: loop body
LE: loop exit
PB: predicated region body
PF: predicated region fallthrough
CT: control target
= control target key end

     0   :  { %s1673_s0 = inlined_call_operand.hbm [shape: f32[8,384], index: 0, kind: input, shape index: {}]   ;;  %s1674_s1 = inlined_call_operand.hbm [shape: f32[1,384], index: 1, kind: input, shape index: {}]   ;;  %s1675_s2 = inlined_call_operand.hbm [shape: f32[1,384], index: 2, kind: input, shape index: {}]   ;;  %s1676_s3 = inlined_call_operand.hbm [shape: bf16[384,128], index: 3, kind: input, shape index: {}]   ;;  %s1677_s4 = inlined_call_operand.hbm [shape: f32[8,20], index: 4, kind: input, shape index: {}]   ;;  %s1678_s5 = inlined_call_operand.vmem [shape: f32[1,20], index: 5, kind: input, shape index: {}]   ;;  %s1679_s6 = inlined_call_operand.vmem [shape: f32[1,20], index: 6, kind: input, shape index: {}]   ;;  %s1680_s7 = inlined_call_operand.vmem [shape: bf16[20,128], index: 7, kind: input, shape index: {}]   ;;  %s1681_s8 = inlined_call_operand.vmem [shape: f32[1,128], index: 8, kind: input, shape index: {}]   ;;  %s1682_s9 = inlined_call_operand.vmem [shape: f32[1,128], index: 9, kind: input, shape index: {}]   ;;  %s1683_s10 = inlined_call_operand.<no memory space> [shape: f32[1,1], index: 10, kind: input, shape index: {}]   ;;  %s1684_s11 = inlined_call_operand.hbm [shape: f32[8,128], index: 11, kind: output, shape index: {}]  }
   0x1   :  { %1691 = sst [smem:[#allocation22_spill]] %s1674_s1  ;;  %v16_v0 = vstv %s1683_s10 }
   0x2   :  { %1692 = sst [smem:[#allocation23_spill]] %s1677_s4  ;;  %17 = vst [vmem:[#allocation3] sm:$0x1] %v16_v0 }
   0x3   :  { %1693 = sst [smem:[#allocation24_spill]] %s1682_s9 }
   0x4   :  { %1694 = sst [smem:[#allocation25_spill]] %s1684_s11 }
   0x5   :  { %18 = vsyncpa [#allocation5], 0 }
   0x6   :  { %20 = vsyncpa [#allocation5 + $0x1], 0 }
   0x7   :  { %21 = vsyncpa [#allocation8], 0 }
   0x8   :  { %23 = vsyncpa [#allocation8 + $0x1], 0 }
   0x9   :  { %24 = vsyncpa [#allocation11], 0 }
   0xa   :  { %26 = vsyncpa [#allocation11 + $0x1], 0 }
   0xb   :  { %27 = vsyncpa [#allocation6], 0  ;;  %s1395_s19 = smov 0   ;;  %s1397_s20 = smov 0  }
   0xc   :  { %s1399_s21 = smov 0   ;;  %s1401_s22 = smov 0  }
   0xd LB: > { %1695 = sst [smem:[#allocation19_spill]] %s1313_s21  ;;  %s1414_s10 = sadd.s32 4294967295, %s1317_s22   ;;  %s1317_s22 = sphi %s1401_s22, %s1714_s22   ;;  %s1313_s21 = sphi %s1399_s21, %s1716_s21   ;;  %s1309_s20 = sphi %s1397_s20, %s1718_s20   ;;  %s1305_s19 = sphi %s1395_s19, %s1717_s19  }
   0xe   : > { %s1417_s23 = sadd.s32 1, %s1317_s22   ;;  %s40_s25 = sadd.s32 1, %s1313_s21 }
   0xf   : > { %1696 = sst [smem:[#allocation20_spill]] %s1417_s23  ;;  %s37_s24 = ssub.s32 %s1317_s22, %s1417_s23 }
  0x10   : > { %p38_p0 = scmp.eq.s32.totalorder %s37_s24, 0  ;;  %p47_p1 = scmp.ne.s32.totalorder %s1313_s21, %s1309_s20 }
  0x11   : > { %p48_p2 = scmp.eq.s32.totalorder %s1317_s22, 0  ;;  %p53_p3 = scmp.ne.s32.totalorder %s1309_s20, %s1305_s19 }
  0x12   : > { %s1427_s26 = scalar_select %p38_p0, %s1313_s21, %s40_s25  }
  0x13   : > { %p1429_p4 = por %p48_p2, %p47_p1  ;;  %p1690_p5 = scmp.eq.s32.totalorder %s1414_s10, 0 }
  0x14   : > { %1697 = sst [smem:[#allocation21_spill]] %s1427_s26  ;;  %p936_p6 = scmp.ge.s32.totalorder %s1317_s22, 1 }
  0x15   : > { %p310_p7 = scmp.lt.s32.totalorder %s1317_s22, 4  ;;  %p1438_p8 = por %p1690_p5, %p53_p3 }
  0x16   : > { %s1319_s30 = smov [#allocation12]   ;;  %p1045_p12 = scmp.lt.s32.totalorder %s1317_s22, 3 }
  0x17   : > { %s1699_s28 = scalar_select %p1438_p8, 1, 0 }
  0x18   : > { %p1443_p10 = pnand %p936_p6, %p310_p7  ;;  %s323_s12 = sshll.u32 %s1319_s30, 4  ;;  %s324_s12 = int_to_ptr.vmem [resolvable:$true] %s323_s12 }
  0x19   : > { %s1451_s13 = sand.u32 1, %s1313_s21   ;;  %p1458_p0 = pnand %p1045_p12, %p1429_p4 }
  0x1a   : > { %s1700_s29 = scalar_select %p1443_p10, 1, 0 }
  0x1b   : > { %p1027_p11 = pneg %p1443_p10  ;;  %s1116_s16 = scalar_lea.vmem %s324_s12, 128 }
  0x1c   : > { %p1117_p2 = scmp.ne.s32.totalorder %s324_s12, %s1116_s16  ;;  %p1124_p7 = scmp.lt.s32.totalorder %s324_s12, %s324_s12 }
  0x1d   : > { %p1028_p13 = pnand %p1027_p11, %p1690_p5  ;;  %p1125_p9 = scmp.lt.s32.totalorder %s1116_s16, %s1116_s16 }
  0x1f   : > { %p1107_p1 = pneg %p1028_p13  ;;  %p1126_p8 = por %p1125_p9, %p1124_p7 }
  0x21   : > { %p1119_p3 = pnand %p1117_p2, %p1107_p1 }
  0x23   : > { %p1120_p6 = pneg %p1119_p3 }
  0x25   : > { %p1127_p10 = pnand %p1126_p8, %p1120_p6 }
  0x27   : > { %1130 = shalt.err (!%p1127_p10)
}
  0x28   : > { %s1702_s4 = sld [smem:[#allocation23_spill]]  ;;  %s941_s19 = sshll.u32 %s1317_s22, 4 }
  0x29   : > { %s1703_s1 = sld [smem:[#allocation22_spill]]  ;;  %s373_s30 = scalar_lea.vmem [#allocation7], %s1451_s13 }
  0x2a   : > { %s380_s16 = sshll.u32 %s373_s30, 4  ;;  %s1475_s17 = scalar_lea.hbm %s1675_s2, %s941_s19  ;;  %s381_s16 = int_to_ptr.vmem [resolvable:$true] %s380_s16 }
  0x2b   : > { %s1704_s18 = sand.u32 1, %s1317_s22   ;;  %p1485_p8 = pneg %p1458_p0 }
  0x2c   : > { %s1479_s21 = scalar_lea.sflag [#allocation8], %s1704_s18 }
  0x2e   : > { %1030 = dma.hbm_to_vmem [thread:$0]  (!%p1028_p13), %s1702_s4, 128, %s324_s12, [#allocation11]  }
  0x2f   : > { %s1469_s27 = scalar_lea.hbm %s1703_s1, %s941_s19  ;;  %s1136_s26 = scalar_lea.hbm %s1703_s1, 48 }
  0x30   : > { %s1131_s12 = scalar_lea.hbm %s1469_s27, 16  ;;  %p1137_p11 = scmp.lt.s32.totalorder %s1469_s27, %s1703_s1 }
  0x31   : > { %p1132_p4 = scmp.ne.s32.totalorder %s1469_s27, %s1131_s12  ;;  %p1138_p12 = scmp.lt.s32.totalorder %s1136_s26, %s1131_s12 }
  0x33   : > { %p1134_p9 = pnand %p1485_p8, %p1132_p4  ;;  %p1139_p13 = por %p1138_p12, %p1137_p11 }
  0x35   : > { %p1135_p10 = pneg %p1134_p9 }
  0x37   : > { %p1140_p1 = pnand %p1139_p13, %p1135_p10 }
  0x39   : > { %1143 = shalt.err (!%p1140_p1)
}
  0x3a   : > { %s1144_s18 = scalar_lea.vmem %s381_s16, 16  ;;  %s1320_s4 = smov [#allocation7]  }
  0x3b   : > { %p1145_p2 = scmp.ne.s32.totalorder %s381_s16, %s1144_s18  ;;  %s1149_s23 = sshll.u32 %s1320_s4, 4  ;;  %s1150_s23 = int_to_ptr.vmem [resolvable:$false] %s1149_s23 }
  0x3c   : > { %s1151_s11 = scalar_lea.vmem %s1150_s23, 32  ;;  %p1152_p7 = scmp.lt.s32.totalorder %s381_s16, %s1150_s23 }
  0x3d   : > { %p1147_p3 = pnand %p1145_p2, %p1485_p8  ;;  %p1153_p4 = scmp.lt.s32.totalorder %s1151_s11, %s1144_s18 }
  0x3f   : > { %p1148_p6 = pneg %p1147_p3  ;;  %p1154_p9 = por %p1153_p4, %p1152_p7 }
  0x41   : > { %p1155_p5 = pnand %p1154_p9, %p1148_p6 }
  0x43   : > { %1158 = shalt.err (!%p1155_p5)
}
  0x44   : > { %1037 = dma.hbm_to_vmem [thread:$0]  (!%p1458_p0), %s1469_s27, 16, %s381_s16, %s1479_s21  }
  0x45   : > { %s939_s12 = sshll.u32 %s1451_s13, 3  ;;  %s940_s25 = sshll.u32 %s1317_s22, 7 }
  0x46   : > { %s1509_s23 = scalar_lea.hbm %s1673_s0, %s940_s25  ;;  %s356_s11 = scalar_lea.vmem [#allocation4], %s939_s12 }
  0x47   : > { %s363_s26 = sshll.u32 %s356_s11, 4  ;;  %s390_s14 = scalar_lea.vmem [#allocation9], %s1451_s13  ;;  %s364_s26 = int_to_ptr.vmem [resolvable:$true] %s363_s26 }
  0x48   : > { %s397_s19 = sshll.u32 %s390_s14, 4  ;;  %s353_s18 = scalar_lea.sflag [#allocation5], %s1451_s13  ;;  %s398_s19 = int_to_ptr.vmem [resolvable:$true] %s397_s19 }
  0x49   : > { %s1159_s1 = scalar_lea.hbm %s1509_s23, 128  ;;  %s1164_s4 = scalar_lea.hbm %s1673_s0, 384 }
  0x4a   : > { %p1160_p5 = scmp.ne.s32.totalorder %s1509_s23, %s1159_s1  ;;  %p1165_p12 = scmp.lt.s32.totalorder %s1509_s23, %s1673_s0 }
  0x4b   : > { %p1166_p13 = scmp.lt.s32.totalorder %s1164_s4, %s1159_s1 }
  0x4c   : > { %p1162_p10 = pnand %p1160_p5, %p1485_p8 }
  0x4d   : > { %p1167_p1 = por %p1166_p13, %p1165_p12 }
  0x4e   : > { %p1163_p11 = pneg %p1162_p10 }
  0x50   : > { %p1168_p2 = pnand %p1167_p1, %p1163_p11 }
  0x52   : > { %1171 = shalt.err (!%p1168_p2)
}
  0x53   : > { %s1172_s12 = scalar_lea.vmem %s364_s26, 128  ;;  %s1321_s11 = smov [#allocation4]  }
  0x54   : > { %p1173_p3 = scmp.ne.s32.totalorder %s364_s26, %s1172_s12  ;;  %s1177_s14 = sshll.u32 %s1321_s11, 4  ;;  %s1178_s14 = int_to_ptr.vmem [resolvable:$false] %s1177_s14 }
  0x55   : > { %s1179_s9 = scalar_lea.vmem %s1178_s14, 256  ;;  %p1180_p4 = scmp.lt.s32.totalorder %s364_s26, %s1178_s14 }
  0x56   : > { %p1175_p6 = pnand %p1173_p3, %p1485_p8  ;;  %p1181_p9 = scmp.lt.s32.totalorder %s1179_s9, %s1172_s12 }
  0x58   : > { %p1176_p7 = pneg %p1175_p6  ;;  %p1182_p5 = por %p1181_p9, %p1180_p4 }
  0x5a   : > { %p1183_p10 = pnand %p1182_p5, %p1176_p7 }
  0x5c   : > { %1186 = shalt.err (!%p1183_p10)
}
  0x5d   : > { %1034 = dma.hbm_to_vmem [thread:$0]  (!%p1458_p0), %s1509_s23, 128, %s364_s26, %s353_s18  }
  0x5e   : > { %s943_s1 = sshll.u32 %s1451_s13, 6  ;;  %s1187_s27 = scalar_lea.hbm %s1475_s17, 16 }
  0x5f   : > { %p1188_p11 = scmp.ne.s32.totalorder %s1475_s17, %s1187_s27  ;;  %s1192_s4 = scalar_lea.hbm %s1675_s2, 48 }
  0x60   : > { %p1193_p1 = scmp.lt.s32.totalorder %s1475_s17, %s1675_s2  ;;  %p1194_p2 = scmp.lt.s32.totalorder %s1192_s4, %s1187_s27 }
  0x61   : > { %p1190_p12 = pnand %p1188_p11, %p1485_p8 }
  0x62   : > { %p1195_p3 = por %p1194_p2, %p1193_p1 }
  0x63   : > { %p1191_p13 = pneg %p1190_p12 }
  0x65   : > { %p1196_p6 = pnand %p1195_p3, %p1191_p13 }
  0x67   : > { %1199 = shalt.err (!%p1196_p6)
}
  0x68   : > { %s1200_s23 = scalar_lea.vmem %s398_s19, 16  ;;  %s1322_s13 = smov [#allocation9]  }
  0x69   : > { %p1201_p7 = scmp.ne.s32.totalorder %s398_s19, %s1200_s23  ;;  %s1205_s26 = sshll.u32 %s1322_s13, 4  ;;  %s1206_s26 = int_to_ptr.vmem [resolvable:$false] %s1205_s26 }
  0x6a   : > { %s1207_s18 = scalar_lea.vmem %s1206_s26, 32  ;;  %p1208_p5 = scmp.lt.s32.totalorder %s398_s19, %s1206_s26 }
  0x6b   : > { %p1203_p4 = pnand %p1201_p7, %p1485_p8  ;;  %p1209_p10 = scmp.lt.s32.totalorder %s1207_s18, %s1200_s23 }
  0x6d   : > { %p1204_p9 = pneg %p1203_p4  ;;  %p1210_p11 = por %p1209_p10, %p1208_p5 }
  0x6f   : > { %p1211_p12 = pnand %p1210_p11, %p1204_p9 }
  0x71   : > { %1214 = shalt.err (!%p1211_p12)
}
  0x72   : > { %1040 = dma.hbm_to_vmem [thread:$0]  (!%p1458_p0), %s1475_s17, 16, %s398_s19, %s1479_s21  }
  0x73   : > { %s970_s12 = sshll.u32 %s1317_s22, 10  ;;  %s408_s9 = scalar_lea.vmem [#allocation10], %s943_s1 }
  0x74   : > { %s1551_s27 = scalar_lea.hbm %s1676_s3, %s970_s12  ;;  %s415_s16 = sshll.u32 %s408_s9, 4  ;;  %s1553_s16 = int_to_ptr.vmem [resolvable:$true] %s415_s16 }
  0x75   : > { %s1706_s4 = sand.u32 1, %s1317_s22   ;;  %s1215_s30 = scalar_lea.hbm %s1551_s27, 1024 }
  0x76   : > { %s1557_s25 = scalar_lea.sflag [#allocation11], %s1706_s4  ;;  %p1216_p13 = scmp.ne.s32.totalorder %s1551_s27, %s1215_s30 }
  0x77   : > { %s1220_s19 = scalar_lea.hbm %s1676_s3, 3072  ;;  %p1221_p3 = scmp.lt.s32.totalorder %s1551_s27, %s1676_s3 }
  0x78   : > { %p1218_p1 = pnand %p1216_p13, %p1485_p8  ;;  %p1222_p6 = scmp.lt.s32.totalorder %s1220_s19, %s1215_s30 }
  0x7a   : > { %p1219_p2 = pneg %p1218_p1  ;;  %p1223_p7 = por %p1222_p6, %p1221_p3 }
  0x7c   : > { %p1224_p4 = pnand %p1223_p7, %p1219_p2 }
  0x7e   : > { %1227 = shalt.err (!%p1224_p4)
}
  0x7f   : > { %s1228_s22 = scalar_lea.vmem %s1553_s16, 1024  ;;  %s1323_s1 = smov [#allocation10]  }
  0x80   : > { %p1229_p9 = scmp.ne.s32.totalorder %s1553_s16, %s1228_s22  ;;  %s1233_s26 = sshll.u32 %s1323_s1, 4  ;;  %s1234_s26 = int_to_ptr.vmem [resolvable:$false] %s1233_s26 }
  0x81   : > { %s1235_s18 = scalar_lea.vmem %s1234_s26, 2048  ;;  %p1236_p11 = scmp.lt.s32.totalorder %s1553_s16, %s1234_s26 }
  0x82   : > { %p1231_p5 = pnand %p1229_p9, %p1485_p8  ;;  %p1237_p12 = scmp.lt.s32.totalorder %s1235_s18, %s1228_s22 }
  0x84   : > { %p1232_p10 = pneg %p1231_p5  ;;  %p1238_p13 = por %p1237_p12, %p1236_p11 }
  0x86   : > { %p1239_p1 = pnand %p1238_p13, %p1232_p10 }
  0x88   : > { %1242 = shalt.err (!%p1239_p1)
}
  0x89   : > { %s1324_s12 = smov 64   ;;  %s1325_s11 = smov 4  }
  0x8a   : > { %1043 = dma.hbm_to_vmem [thread:$0]  (!%p1458_p0), %s1551_s27, 1024, %s1553_s16, %s1557_s25, %s1324_s12, %s1324_s12, %s1325_s11  }
  0x8b   : > { %p1707_p8 = scmp.ne.s32.totalorder %s1700_s29, 0 }
  0x8c   : > { %s1583_s24 = sand.u32 (!%p1707_p8), 1, %s1309_s20   ;;  %p1708_p2 = scmp.ne.s32.totalorder (!%p1707_p8), %s1699_s28, 0 }
  0x8d   : > { %427 = sbr.rel (%p1707_p8) target bundleno = 957 (0x3bd), region = 64  ;;  %s947_s14 = sshll.u32 (!%p1707_p8), %s1583_s24, 3 }
  0x8e   : > { %s430_s9 = scalar_lea.sflag (!%p1707_p8), [#allocation5], %s1583_s24  ;;  %s1587_s4 = scalar_lea.vmem (!%p1707_p8), [#allocation4], %s947_s14 }
  0x92   : > { %1284 = dma.done.wait (%p1708_p2), %s430_s9, 128  }
  0x93   : > { %1286 = vsyncadd (%p1708_p2), %s430_s9, 4294967168  ;;  %s438_s29 = sand.u32 1, %s1414_s10   ;;  %s441_s27 = scalar_lea.vmem [#allocation7], %s1583_s24 }
  0x94   : > { %s439_s15 = scalar_lea.sflag [#allocation8], %s438_s29 }
  0x95   : > { %1288 = dma.done.wait (%p1708_p2), %s439_s15, 32  }
  0x96   : > { %1290 = vsyncadd (%p1708_p2), %s439_s15, 4294967264  ;;  %s948_s16 = sshll.u32 %s1583_s24, 6  ;;  %s449_s25 = scalar_lea.vmem [#allocation9], %s1583_s24 }
  0x97   : > { %s455_s30 = scalar_lea.sflag [#allocation11], %s438_s29  ;;  %s1601_s21 = scalar_lea.vmem [#allocation10], %s948_s16 }
  0x98   : > { %1292 = dma.done.wait (%p1708_p2), %s455_s30, 1024  }
  0x99   : > { %1294 = vsyncadd (%p1708_p2), %s455_s30, 4294966272  ;;  %p1709_p0 = scmp.eq.s32.totalorder %s1414_s10, 0 }
  0x9b   : > { %1296 = dma.done.wait (%p1709_p0), [#allocation11], 128   ;;  %p1710_p3 = pmov %p1709_p0 }
  0x9c   : > { %p1711_p6 = scmp.ne.s32.totalorder %s1414_s10, 0 }
  0x9d   : > { %1298 = vsyncadd (%p1710_p3), [#allocation11], 4294967168 }
  0x9e   : > { %514 = sbr.rel (%p1711_p6) target bundleno = 413 (0x19d), region = 88 }
  0xa3   : > { %v1090_v1 = vld [vmem:[%s1680_s7 + $0x8] ss:$0 sps:$4 sm:$0x33]   ;;  %v1326_v2 = vmov 0.0   ;;  %vm576_vm0 = vcmask 1041408   ;;  %v515_v4 = vld [vmem:[#allocation12] sm:$0xff]  ;;  %v546_v27 = vlaneseq }
  0xa4   : > { %983 = vmatprep.subr.bf16.mxu0 %v1326_v2  ;;  %v578_v3 = vsel %vm576_vm0, %v1090_v1, 0  ;;  %vm518_vm1 = vcmask 162816   ;;  %v1091_v5 = vld [vmem:[%s1680_s7] sm:$0xff]   ;;  %vm1327_vm2 = vmmov 0   ;;  %v528_v7 = vmul.f32 %v515_v4, %v515_v4 }
  0xa5   : > { %984 = vmatpush3.bf16.msra.mxu0 %v578_v3  ;;  %987 = vmatprep.mubr.msk.bf16.mxu0 %vm1327_vm2, %v1326_v2  ;;  %v519_v6 = vsel %vm518_vm1, %v515_v4, 0.0  ;;  %v547_v28 = vshrl.u32 %v546_v27, 7  ;;  %v516_v29 = vld [vmem:[%s1678_s5] sm:$0x1] }
  0xa6   : > { %985 = vmatprep.subr.bf16.mxu0 %v1326_v2  ;;  %v520_v8 = vrot.slane %v519_v6, 4  ;;  %v529_v9 = vsel %vm518_vm1, %v528_v7, 0.0  ;;  %v517_v33 = vld [vmem:[%s1679_s6] sm:$0x1] }
  0xa7   : > { %v530_v11 = vrot.slane %v529_v9, 4  ;;  %v548_v30 = vsub.s32 0, %v547_v28  ;;  %v954_v41 = vld [vmem:[%s1681_s8] ss:$0 sm:$0xff] }
  0xa8   : > { %v521_v10 = vadd.f32 %v520_v8, %v519_v6 }
  0xa9   : > { %986 = vmatpush3.bf16.msra.mxu0 %v1091_v5  ;;  %v531_v13 = vadd.f32 %v530_v11, %v529_v9 }
  0xaa   : > { %v522_v12 = vrot.slane %v521_v10, 2 }
  0xab   : > { %v532_v15 = vrot.slane %v531_v13, 2 }
  0xac   : > { %v523_v14 = vadd.f32 %v522_v12, %v521_v10 }
  0xad   : > { %v533_v17 = vadd.f32 %v532_v15, %v531_v13 }
  0xae   : > { %v524_v16 = vrot.slane %v523_v14, 1 }
  0xaf   : > { %v534_v19 = vrot.slane %v533_v17, 1 }
  0xb0   : > { %v525_v18 = vadd.f32 %v524_v16, %v523_v14 }
  0xb1   : > { %v535_v21 = vadd.f32 %v534_v19, %v533_v17 }
  0xb2   : > { %v527_v20 = vmul.f32 0.125, %v525_v18 }
  0xb3   : > { %v536_v22 = vmul.f32 0.125, %v535_v21 }
  0xb4   : > { %v537_v23 = vmul.f32 %v527_v20, %v527_v20 }
  0xb6   : > { %v538_v24 = vsub.f32 %v536_v22, %v537_v23 }
  0xb8   : > { %v539_v25 = vmax.f32 %v538_v24, 0.0 }
  0xba   : > { %v540_v26 = vadd.f32 1e-05, %v539_v25 }
  0xbc   : > { %1092 = vrsqrt.f32 %v540_v26 }
  0xc9   : > { %v1093_v31 = vpop.eup %1092 }
  0xca   : > { %v542_v32 = vmul.f32 %v1093_v31, %v516_v29 }
  0xcc   : > { %v543_v34 = vmul.f32 %v542_v32, %v527_v20  ;;  %v549_v35 = vrot.slane %v542_v32, %v548_v30 }
  0xce   : > { %v544_v36 = vsub.f32 %v517_v33, %v543_v34  ;;  %v551_v37 = vmul.f32 %v549_v35, %v515_v4 }
  0xd0   : > { %v556_v38 = vrot.slane %v544_v36, %v548_v30 }
  0xd2   : > { %v558_v39 = vadd.f32 %v556_v38, %v551_v37 }
  0xd4   : > { %v559_v40 = vpack.c.bf16 %v558_v39, %v558_v39 }
  0xd6   : > { %988 = vmatmul.mubr.msk.bf16.vlgmr.msra.gmra.mxu0 %vm518_vm1, %v559_v40 }
 0x196   : > { %v614_v42 = vpop.f32.mrf.mxu0 }
 0x197   : > { %v626_v43 = vadd.f32 %v954_v41, %v614_v42 }
 0x198   : > { %v989_v44 = vpop.f32.mrf.mxu0 }
 0x199   : > { %627 = vst [vmem:[#allocation2] sm:$0xff] %v626_v43 }
 0x19a   : > { %v617_v45 = vpop.f32.mrf.mxu0 }
 0x19c   : > { %v990_v46 = vpop.f32.mrf.mxu0 }
 0x19d PF: > { %v1094_v47 = vld [vmem:[%s1601_s21 + $0x38] sm:$0xff]   ;;  %v1328_v48 = vmov 0.0   ;;  %v1095_v49 = vld [vmem:[%s1601_s21 + $0x30] sm:$0xff]   ;;  %vm1329_vm3 = vmmov 0   ;;  %v1096_v50 = vld [vmem:[%s1601_s21 + $0x28] sm:$0xff]   ;;  %v656_v12 = vlaneseq  ;;  %p963_p7 = scmp.ne.s32.totalorder %s1414_s10, 2 }
 0x19e   : > { %991 = vmatprep.subr.bf16.mxu0 %v1328_v48  ;;  %1007 = vmatprep.mubr.msk.bf16.mxu0 %vm1329_vm3, %v1328_v48  ;;  %v628_v51 = vld [vmem:[%s1587_s4] sm:$0xff]  ;;  %v1097_v54 = vld [vmem:[%s1601_s21 + $0x20] sm:$0xff]   ;;  %s1712_s14 = sld [smem:[#allocation24_spill]] (!%p963_p7) }
 0x19f   : > { %992 = vmatpush3.bf16.msra.mxu0 %v1094_v47  ;;  %v631_v52 = vrot.slane %v628_v51, 4  ;;  %v639_v53 = vmul.f32 %v628_v51, %v628_v51  ;;  %v1098_v59 = vld [vmem:[%s1601_s21 + $0x18] sm:$0xff]   ;;  %v1099_v0 = vld [vmem:[%s1601_s21 + $0x10] sm:$0xff]   ;;  %v1100_v5 = vld [vmem:[%s1601_s21 + $0x8] sm:$0xff]   ;;  %v657_v13 = vshrl.u32 %v656_v12, 7 }
 0x1a0   : > { %993 = vmatprep.subr.bf16.mxu0 %v1328_v48  ;;  %v1101_v9 = vld [vmem:[%s1601_s21] sm:$0xff]  }
 0x1a1   : > { %v632_v55 = vadd.f32 %v631_v52, %v628_v51  ;;  %v640_v56 = vrot.slane %v639_v53, 4  ;;  %v629_v14 = vld [vmem:[%s441_s27] sm:$0x1]  ;;  %v658_v15 = vsub.s32 0, %v657_v13 }
 0x1a2   : > { %v630_v18 = vld [vmem:[%s449_s25] sm:$0x1] }
 0x1a3   : > { %994 = vmatpush3.bf16.msra.mxu0 %v1095_v49  ;;  %v633_v57 = vrot.slane %v632_v55, 2  ;;  %v641_v58 = vadd.f32 %v640_v56, %v639_v53  ;;  %v670_v26 = vld [vmem:[#allocation2] sm:$0xff] }
 0x1a4   : > { %995 = vmatprep.subr.bf16.mxu0 %v1328_v48 }
 0x1a5   : > { %v634_v60 = vadd.f32 %v633_v57, %v632_v55  ;;  %v642_v61 = vrot.slane %v641_v58, 2 }
 0x1a7   : > { %996 = vmatpush3.bf16.msra.mxu0 %v1096_v50  ;;  %v635_v62 = vrot.slane %v634_v60, 1  ;;  %v643_v63 = vadd.f32 %v642_v61, %v641_v58 }
 0x1a8   : > { %997 = vmatprep.subr.bf16.mxu0 %v1328_v48 }
 0x1a9   : > { %v636_v1 = vadd.f32 %v635_v62, %v634_v60  ;;  %v644_v2 = vrot.slane %v643_v63, 1 }
 0x1ab   : > { %998 = vmatpush3.bf16.msra.mxu0 %v1097_v54  ;;  %v638_v3 = vmul.f32 0.125, %v636_v1  ;;  %v645_v4 = vadd.f32 %v644_v2, %v643_v63 }
 0x1ac   : > { %999 = vmatprep.subr.bf16.mxu0 %v1328_v48 }
 0x1ad   : > { %v646_v6 = vmul.f32 0.125, %v645_v4  ;;  %v647_v7 = vmul.f32 %v638_v3, %v638_v3 }
 0x1af   : > { %1000 = vmatpush3.bf16.msra.mxu0 %v1098_v59  ;;  %v648_v8 = vsub.f32 %v646_v6, %v647_v7 }
 0x1b0   : > { %1001 = vmatprep.subr.bf16.mxu0 %v1328_v48 }
 0x1b1   : > { %v649_v10 = vmax.f32 %v648_v8, 0.0 }
 0x1b3   : > { %1002 = vmatpush3.bf16.msra.mxu0 %v1099_v0  ;;  %v650_v11 = vadd.f32 1e-05, %v649_v10 }
 0x1b4   : > { %1003 = vmatprep.subr.bf16.mxu0 %v1328_v48 }
 0x1b5   : > { %1102 = vrsqrt.f32 %v650_v11 }
 0x1b7   : > { %1004 = vmatpush3.bf16.msra.mxu0 %v1100_v5 }
 0x1b8   : > { %1005 = vmatprep.subr.bf16.mxu0 %v1328_v48 }
 0x1bb   : > { %1006 = vmatpush3.bf16.msra.mxu0 %v1101_v9 }
 0x1c2   : > { %v1103_v16 = vpop.eup %1102 }
 0x1c3   : > { %v652_v17 = vmul.f32 %v1103_v16, %v629_v14 }
 0x1c5   : > { %v653_v19 = vmul.f32 %v652_v17, %v638_v3  ;;  %v659_v20 = vrot.slane %v652_v17, %v658_v15 }
 0x1c7   : > { %v654_v21 = vsub.f32 %v630_v18, %v653_v19  ;;  %v661_v22 = vmul.f32 %v659_v20, %v628_v51 }
 0x1c9   : > { %v666_v23 = vrot.slane %v654_v21, %v658_v15 }
 0x1cb   : > { %v668_v24 = vadd.f32 %v666_v23, %v661_v22 }
 0x1cd   : > { %v669_v25 = vpack.c.bf16 %v668_v24, %v668_v24 }
 0x1cf   : > { %1008 = vmatmul.mubr.bf16.vlgmr.msra.gmra.mxu0 %v669_v25 }
 0x28f   : > { %v769_v27 = vpop.f32.mrf.mxu0 }
 0x290   : > { %v775_v28 = vadd.f32 %v769_v27, %v670_v26 }
 0x291   : > { %v1009_v29 = vpop.f32.mrf.mxu0  ;;  %780 = sbr.rel (%p963_p7) target bundleno = 936 (0x3a8), region = 92 }
 0x292   : > { %776 = vst [vmem:[#allocation2] sm:$0xff] %v775_v28 }
 0x293   : > { %v772_v30 = vpop.f32.mrf.mxu0 }
 0x295   : > { %v1010_v31 = vpop.f32.mrf.mxu0 }
 0x296   : > { %v964_v34 = vld [vmem:[%s1712_s14] ss:$0 sm:$0xff]  ;;  %v1330_v37 = vmov 0   ;;  %v965_v38 = vld [vmem:[#allocation3] ss:$0 sm:$0xff] }
 0x297   : > { %1104 = vset.pattern.permute.xlu0 %v1330_v37 }
 0x299   : > { %v781_v32 = vld [vmem:[#allocation2] sm:$0xff] }
 0x29a   : > { %vm782_vm4 = vcmp.ge.f32.partialorder %v781_v32, 0.0  ;;  %v783_v33 = vmul.f32 0.01, %v781_v32 }
 0x29c   : > { %v784_v35 = vsel %vm782_vm4, %v781_v32, %v783_v33 }
 0x29d   : > { %v792_v36 = vmul.f32 %v964_v34, %v784_v35 }
 0x29f   : > { %793 = vadd.xlane.f32.xlu0 %v792_v36 }
 0x328   : > { %v794_v39 = vpop.xlane.xlu0 %793 }
 0x329   : > { %v802_v40 = vadd.f32 %v965_v38, %v794_v39 }
 0x32b   : > { %805 = vperm.xlu0 %1104, %v802_v40  }
 0x3a6   : > { %v806_v41 = vpop.permute.xlu0 %805 }
 0x3a7   : > { %808 = vst [vmem:[#allocation13] sm:$0xff] %v806_v41 }
 0x3a8 PF: > { %p1047_p4 = scmp.eq.s32.totalorder %s1414_s10, 2  ;;  %s1331_s9 = smov [#allocation13]  }
 0x3a9   : > { %s816_s4 = sshll.u32 %s1331_s9, 4  ;;  %s817_s4 = int_to_ptr.vmem [resolvable:$true] %s816_s4 }
 0x3aa   : > { %s1243_s29 = scalar_lea.vmem %s817_s4, 128  ;;  %p1250_p11 = scmp.lt.s32.totalorder %s817_s4, %s817_s4 }
 0x3ab   : > { %p1244_p9 = scmp.ne.s32.totalorder %s817_s4, %s1243_s29  ;;  %p1251_p12 = scmp.lt.s32.totalorder %s1243_s29, %s1243_s29 }
 0x3ad   : > { %p1245_p5 = pnand %p1244_p9, %p1047_p4  ;;  %p1252_p13 = por %p1251_p12, %p1250_p11 }
 0x3af   : > { %p1246_p10 = pneg %p1245_p5 }
 0x3b1   : > { %p1253_p1 = pnand %p1252_p13, %p1246_p10 }
 0x3b3   : > { %1256 = shalt.err (!%p1253_p1)
}
 0x3b4   : > { %s1713_s16 = sld [smem:[#allocation25_spill]] }
 0x3ba   : > { %1024 = dma.vmem_to_hbm [thread:$0]  (%p1047_p4), %s817_s4, 128, %s1713_s16, [#allocation6]  }
 0x3bb   : > { %1300 = dma.done.wait (%p1047_p4), [#allocation6], 128  }
 0x3bc   : > { %1302 = vsyncadd (%p1047_p4), [#allocation6], 4294967168 }
 0x3bd PF: > { %s1714_s22 = sld [smem:[#allocation20_spill]]  ;;  %s1717_s19 = smov %s1309_s20 }
 0x3be   : > { %s1715_s25 = sld [smem:[#allocation19_spill]] }
 0x3bf   : > { %s1716_s21 = sld [smem:[#allocation21_spill]] }
 0x3c3   : > { %p30_p8 = scmp.ge.s32.totalorder %s1714_s22, 5  }
 0x3c4   : > { %s1718_s20 = smov %s1715_s25 }
 0x3c5   :  { %32 = sbr.rel (!%p30_p8) target bundleno = 13 (0xd), region = 150 }
 0x3ca   :  { %829 = vsyncpa [#allocation5], 1 }
 0x3cb   :  { %831 = vsyncpa [#allocation5 + $0x1], 1 }
 0x3cc   :  { %832 = vsyncpa [#allocation8], 1 }
 0x3cd   :  { %834 = vsyncpa [#allocation8 + $0x1], 1 }
 0x3ce   :  { %835 = vsyncpa [#allocation11], 1 }
 0x3cf   :  { %837 = vsyncpa [#allocation11 + $0x1], 1 }
 0x3d0   :  { %838 = vsyncpa [#allocation6], 1 }
 0x3d1   :  { %840 = vsyncpa [#allocation6 + $0x1], 1 }

</bundles_post_ra>
